<compile_context>
chip_gen: v6e
topology: v6e:2x2x1
jax: 0.10.0
libtpu: 0.0.40
codegen_flags: <defaults>
</compile_context>

<pallas_src>
import jax
import jax.numpy as jnp
import numpy as np
from jax.experimental import pallas as pl
from jax.experimental.pallas import tpu as pltpu

BLOCK_NUM = 3
NEG_SLOPE = 0.1        # LeakyReLU(0.1)
LANE = 128             # TPU lane width
MAX_TILE_COLS = 512    # columns per grid step (multiple of 128 -> v5e-friendly)


def _round_up(n, m):
    return ((n + m - 1) // m) * m


def _leaky(v):
    return jnp.where(v > 0, v, NEG_SLOPE * v)


def _bf16(v):
    return v.astype(jnp.bfloat16)


# ---------------------------------------------------------------------------
# Kernel bodies (transposed layout: activations are (channels, columns)).
# ---------------------------------------------------------------------------
def conv_resblock_kernel(x_ref,
                         w_in_ref, b_in_ref,
                         w1_ref, b1_ref, w2_ref, b2_ref,
                         w_out_ref, b_out_ref,
                         o_ref):
    x = x_ref[...]                                               # bf16 (C_in, T)
    # in_conv: Conv1d(k=1) + LeakyReLU(0.1)
    h = _leaky(jnp.dot(w_in_ref[...], x,
                       preferred_element_type=jnp.float32) + b_in_ref[...])
    # residual blocks (static unroll -> full LLO scheduling visibility)
    for k in range(BLOCK_NUM):
        x0 = h
        t = _leaky(jnp.dot(w1_ref[k], _bf16(h),
                           preferred_element_type=jnp.float32) + b1_ref[k])
        t = jnp.dot(w2_ref[k], _bf16(t),
                    preferred_element_type=jnp.float32) + b2_ref[k]
        h = _leaky(t + x0)
    # out_conv + final ReLU
    h = jnp.dot(w_out_ref[...], _bf16(h),
                preferred_element_type=jnp.float32) + b_out_ref[...]
    o_ref[...] = jnp.maximum(h, 0.0).astype(o_ref.dtype)


def mlp_resblock_kernel(x_ref,
                        w_in_ref, b_in_ref,
                        w1_ref, b1_ref, w2_ref, b2_ref,
                        wo1_ref, bo1_ref, wo2_ref, bo2_ref,
                        o_ref):
    x = x_ref[...]                                               # bf16 (mlp_in, T)
    # in_mlp: Linear + LeakyReLU(0.1)
    h = _leaky(jnp.dot(w_in_ref[...], x,
                       preferred_element_type=jnp.float32) + b_in_ref[...])
    for k in range(BLOCK_NUM):
        x0 = h
        t = _leaky(jnp.dot(w1_ref[k], _bf16(h),
                           preferred_element_type=jnp.float32) + b1_ref[k])
        t = jnp.dot(w2_ref[k], _bf16(t),
                    preferred_element_type=jnp.float32) + b2_ref[k]
        h = _leaky(t + x0)
    # out_mlp: Linear + LeakyReLU + Linear (mlp_resblock has NO final ReLU)
    t = _leaky(jnp.dot(wo1_ref[...], _bf16(h),
                       preferred_element_type=jnp.float32) + bo1_ref[...])
    o_ref[...] = (jnp.dot(wo2_ref[...], _bf16(t),
                          preferred_element_type=jnp.float32)
                  + bo2_ref[...]).astype(o_ref.dtype)


# ---------------------------------------------------------------------------
# pallas_call wrappers (grid over the column axis; weights VMEM-resident).
# ---------------------------------------------------------------------------
def _run_resblock(kernel, x_t, params, out_rows, out_dtype, matmul_dims):
    """x_t: (rows, cols) transposed activations; tiles the column (lane) axis."""
    rows, n = x_t.shape
    tile = min(MAX_TILE_COLS, _round_up(n, LANE))
    n_pad = _round_up(n, tile)
    if n_pad != n:
        x_t = jnp.pad(x_t, ((0, 0), (0, n_pad - n)))
    grid = (n_pad // tile,)

    def const_spec(a):
        zero = (0,) * a.ndim
        return pl.BlockSpec(a.shape, lambda i, z=zero: z)   # fetched once, stays resident

    in_specs = [pl.BlockSpec((rows, tile), lambda i: (0, i))]
    in_specs += [const_spec(p) for p in params]
    out_specs = pl.BlockSpec((out_rows, tile), lambda i: (0, i))

    flops = 2 * n_pad * sum(o * i for o, i in matmul_dims)
    bytes_accessed = int(x_t.size * x_t.dtype.itemsize
                         + sum(int(p.size) * p.dtype.itemsize for p in params)
                         + out_rows * n_pad * np.dtype(out_dtype).itemsize)

    y = pl.pallas_call(
        kernel,
        out_shape=jax.ShapeDtypeStruct((out_rows, n_pad), out_dtype),
        grid=grid,
        in_specs=in_specs,
        out_specs=out_specs,
        compiler_params=pltpu.CompilerParams(
            dimension_semantics=("parallel",)),
        cost_estimate=pl.CostEstimate(flops=int(flops), transcendentals=0,
                                      bytes_accessed=bytes_accessed),
    )(x_t, *params)
    return y[:, :n]


def conv_resblock_pallas(x_cn, params):
    (w_in, b_in, w1, b1, w2, b2, w_out, b_out) = params
    ch, c_in = w_in.shape
    dims = [(ch, c_in)] + [(ch, ch)] * (2 * BLOCK_NUM) + [(ch, ch)]
    return _run_resblock(conv_resblock_kernel, x_cn, params,
                         out_rows=ch, out_dtype=jnp.bfloat16, matmul_dims=dims)


def mlp_resblock_pallas(x_t, params):
    (w_in, b_in, w1, b1, w2, b2, wo1, bo1, wo2, bo2) = params
    ch, mlp_in = w_in.shape
    out_ch = wo2.shape[0]
    dims = [(ch, mlp_in)] + [(ch, ch)] * (2 * BLOCK_NUM) + [(ch, ch), (out_ch, ch)]
    return _run_resblock(mlp_resblock_kernel, x_t, params,
                         out_rows=out_ch, out_dtype=jnp.float32, matmul_dims=dims)


def conv_mlp_net_pallas(obs, conv_params, mlp_params):
    """obs: (B, conv_in, L). Returns (B, out_ch) float32."""
    B, c_in, L = obs.shape
    # conv part in transposed layout: columns are (batch, length) pairs, batch-major.
    x_cn = jnp.transpose(obs.astype(jnp.bfloat16), (1, 0, 2)).reshape(c_in, B * L)
    conv_out = conv_resblock_pallas(x_cn, conv_params)           # (conv_ch, B*L) bf16
    c_conv = conv_out.shape[0]
    # PyTorch: x.view(-1, mlp_in) with mlp_in = conv_ch * L (feature index = c*L + l).
    # Build the transposed mlp input (mlp_in, B) with a tiny host-side relayout.
    mlp_x = (conv_out.reshape(c_conv, B, L)
             .transpose(0, 2, 1)
             .reshape(c_conv * L, B))
    out_t = mlp_resblock_pallas(mlp_x, mlp_params)               # (out_ch, B) f32
    return out_t.T


# ---------------------------------------------------------------------------
# Parameter init (PyTorch default uniform +-1/sqrt(fan_in)) + prep.
# ---------------------------------------------------------------------------
def _init_linear(key, out_dim, in_dim):
    kw, kb = jax.random.split(key)
    bound = 1.0 / np.sqrt(in_dim)
    w = jax.random.uniform(kw, (out_dim, in_dim), jnp.float32, -bound, bound)
    b = jax.random.uniform(kb, (out_dim,), jnp.float32, -bound, bound)
    return w, b


def init_conv_resblock_params(key, in_ch, ch):
    ks = jax.random.split(key, 2 + 2 * BLOCK_NUM)
    w_in, b_in = _init_linear(ks[0], ch, in_ch)
    w1, b1, w2, b2 = [], [], [], []
    for i in range(BLOCK_NUM):
        a, ab = _init_linear(ks[1 + 2 * i], ch, ch)
        c, cb = _init_linear(ks[2 + 2 * i], ch, ch)
        w1.append(a); b1.append(ab); w2.append(c); b2.append(cb)
    w_out, b_out = _init_linear(ks[-1], ch, ch)
    return (w_in, b_in, jnp.stack(w1), jnp.stack(b1),
            jnp.stack(w2), jnp.stack(b2), w_out, b_out)


def init_mlp_resblock_params(key, in_ch, ch, out_ch):
    ks = jax.random.split(key, 3 + 2 * BLOCK_NUM)
    w_in, b_in = _init_linear(ks[0], ch, in_ch)
    w1, b1, w2, b2 = [], [], [], []
    for i in range(BLOCK_NUM):
        a, ab = _init_linear(ks[1 + 2 * i], ch, ch)
        c, cb = _init_linear(ks[2 + 2 * i], ch, ch)
        w1.append(a); b1.append(ab); w2.append(c); b2.append(cb)
    wo1, bo1 = _init_linear(ks[-2], ch, ch)
    wo2, bo2 = _init_linear(ks[-1], out_ch, ch)
    return (w_in, b_in, jnp.stack(w1), jnp.stack(b1),
            jnp.stack(w2), jnp.stack(b2), wo1, bo1, wo2, bo2)


def prep_device_params(params):
    """weights -> bf16 (MXU-native); biases -> f32 column vectors (..., out, 1)."""
    out = []
    for i, p in enumerate(params):            # tuples alternate (w, b, w, b, ...)
        out.append(p.astype(jnp.bfloat16) if i % 2 == 0
                   else p[..., None].astype(jnp.float32))
    return tuple(out)


def prep_reference_params(params):
    """f32 copies of the bf16-rounded weights + 1-D f32 biases for the numpy ref."""
    out = []
    for i, p in enumerate(params):
        out.append(np.asarray(p.astype(jnp.bfloat16).astype(jnp.float32)) if i % 2 == 0
                   else np.asarray(p, dtype=np.float32))
    return tuple(out)


# ---------------------------------------------------------------------------
# NumPy reference: mirrors conv_mlp_net.forward exactly (f32 math).
# ---------------------------------------------------------------------------
def reference_numpy(obs_q, conv_p, mlp_p, mlp_in):
    leaky = lambda v: np.where(v > 0, v, NEG_SLOPE * v)
    conv1x1 = lambda x, w, b: np.einsum('oi,bil->bol', w, x) + b[None, :, None]
    lin = lambda x, w, b: x @ w.T + b

    (cw_in, cb_in, cw1, cb1, cw2, cb2, cw_out, cb_out) = conv_p
    (mw_in, mb_in, mw1, mb1, mw2, mb2, mwo1, mbo1, mwo2, mbo2) = mlp_p

    x = np.asarray(obs_q, dtype=np.float32)
    # conv_resblock: in_conv + 3 res blocks + out_conv + ReLU
    h = leaky(conv1x1(x, cw_in, cb_in))
    for k in range(BLOCK_NUM):
        x0 = h
        t = leaky(conv1x1(h, cw1[k], cb1[k]))
        t = conv1x1(t, cw2[k], cb2[k])
        h = leaky(t + x0)
    h = np.maximum(conv1x1(h, cw_out, cb_out), 0.0)
    # x.view(-1, mlp_in)
    x = h.reshape(-1, mlp_in)
    # mlp_resblock: in_mlp + 3 res blocks + out_mlp (no final ReLU)
    h = leaky(lin(x, mw_in, mb_in))
    for k in range(BLOCK_NUM):
        x0 = h
        t = leaky(lin(h, mw1[k], mb1[k]))
        t = lin(t, mw2[k], mb2[k])
        h = leaky(t + x0)
    t = leaky(lin(h, mwo1, mbo1))
    return lin(t, mwo2, mbo2)


if __name__ == "__main__":
    # Small config consistent with conv_mlp_net:
    #   conv_in=4, conv_ch=8, seq L=16  ->  mlp_in = conv_ch * L = 128
    #   mlp_ch=32, out_ch=8, block_num=3, batch=2
    B, conv_in, conv_ch, L = 2, 4, 8, 16
    mlp_in, mlp_ch, out_ch = conv_ch * L, 32, 8

    key = jax.random.PRNGKey(0)
    k_obs, k_conv, k_mlp = jax.random.split(key, 3)
    obs = jax.random.normal(k_obs, (B, conv_in, L), dtype=jnp.float32)

    conv_p = init_conv_resblock_params(k_conv, conv_in, conv_ch)
    mlp_p = init_mlp_resblock_params(k_mlp, mlp_in, mlp_ch, out_ch)

    conv_dev = prep_device_params(conv_p)
    mlp_dev = prep_device_params(mlp_p)

    out = conv_mlp_net_pallas(obs, conv_dev, mlp_dev)
    out = jax.block_until_ready(out)
    assert out.shape == (B, out_ch), out.shape

    # Reference uses the same bf16-rounded weights/input in f32 math (kernel uses bf16
    # MXU operands with f32 accumulation), so only activation rounding differs.
    obs_q = np.asarray(obs.astype(jnp.bfloat16).astype(jnp.float32))
    ref = reference_numpy(obs_q,
                          prep_reference_params(conv_p),
                          prep_reference_params(mlp_p),
                          mlp_in)
    np.testing.assert_allclose(np.asarray(out), ref, rtol=2e-2, atol=2e-2)

    print("KERNEL_OK")
</pallas_src>

<mosaic_0001>
module attributes {stable_mosaic.version = 11 : i64} {
  func.func @conv_resblock_kernel(%arg0: i32, %arg1: memref<4x128xbf16, #tpu.memory_space<vmem>>, %arg2: memref<8x4xbf16, #tpu.memory_space<vmem>>, %arg3: memref<8x1xf32, #tpu.memory_space<vmem>>, %arg4: memref<3x8x8xbf16, #tpu.memory_space<vmem>>, %arg5: memref<3x8x1xf32, #tpu.memory_space<vmem>>, %arg6: memref<3x8x8xbf16, #tpu.memory_space<vmem>>, %arg7: memref<3x8x1xf32, #tpu.memory_space<vmem>>, %arg8: memref<8x8xbf16, #tpu.memory_space<vmem>>, %arg9: memref<8x1xf32, #tpu.memory_space<vmem>>, %arg10: memref<8x128xbf16, #tpu.memory_space<vmem>>) attributes {dimension_semantics = [#tpu.dimension_semantics<parallel>], iteration_bounds = array<i64: 1>, scalar_prefetch = 0 : i64, scratch_operands = 0 : i64, tpu.core_type = #tpu.core_type<tc>, window_params = [{transform_indices = @transform_0, window_bounds = array<i64: 4, 128>}, {pipeline_mode = #tpu.pipeline_mode<synchronous>, transform_indices = @transform_1, window_bounds = array<i64: 8, 4>}, {pipeline_mode = #tpu.pipeline_mode<synchronous>, transform_indices = @transform_2, window_bounds = array<i64: 8, 1>}, {pipeline_mode = #tpu.pipeline_mode<synchronous>, transform_indices = @transform_3, window_bounds = array<i64: 3, 8, 8>}, {pipeline_mode = #tpu.pipeline_mode<synchronous>, transform_indices = @transform_4, window_bounds = array<i64: 3, 8, 1>}, {pipeline_mode = #tpu.pipeline_mode<synchronous>, transform_indices = @transform_5, window_bounds = array<i64: 3, 8, 8>}, {pipeline_mode = #tpu.pipeline_mode<synchronous>, transform_indices = @transform_6, window_bounds = array<i64: 3, 8, 1>}, {pipeline_mode = #tpu.pipeline_mode<synchronous>, transform_indices = @transform_7, window_bounds = array<i64: 8, 8>}, {pipeline_mode = #tpu.pipeline_mode<synchronous>, transform_indices = @transform_8, window_bounds = array<i64: 8, 1>}, {transform_indices = @transform_9, window_bounds = array<i64: 8, 128>}]} {
    %c0 = arith.constant 0 : index
    %c0_0 = arith.constant 0 : index
    %0 = vector.load %arg1[%c0, %c0_0] : memref<4x128xbf16, #tpu.memory_space<vmem>>, vector<4x128xbf16>
    %c0_1 = arith.constant 0 : index
    %c0_2 = arith.constant 0 : index
    %1 = vector.load %arg2[%c0_1, %c0_2] : memref<8x4xbf16, #tpu.memory_space<vmem>>, vector<8x4xbf16>
    %cst = arith.constant dense<0.000000e+00> : vector<8x128xf32>
    %2 = tpu.matmul %1, %0, %cst {dimension_numbers = #tpu.dot_dimension_numbers<[1], [0], [0], [1], [0, 0, 1, 1], [], []>} : vector<8x4xbf16>, vector<4x128xbf16>, vector<8x128xf32> -> vector<8x128xf32>
    %c0_3 = arith.constant 0 : index
    %c0_4 = arith.constant 0 : index
    %3 = vector.load %arg3[%c0_3, %c0_4] : memref<8x1xf32, #tpu.memory_space<vmem>>, vector<8x1xf32>
    %4 = vector.broadcast %3 : vector<8x1xf32> to vector<8x128xf32>
    %5 = arith.addf %2, %4 : vector<8x128xf32>
    %cst_5 = arith.constant 0.000000e+00 : f32
    %6 = vector.broadcast %cst_5 : f32 to vector<8x128xf32>
    %7 = arith.cmpf ogt, %5, %6 : vector<8x128xf32>
    %cst_6 = arith.constant 1.000000e-01 : f32
    %8 = vector.broadcast %cst_6 : f32 to vector<8x128xf32>
    %9 = arith.mulf %8, %5 : vector<8x128xf32>
    %10 = arith.select %7, %5, %9 : vector<8x128xi1>, vector<8x128xf32>
    %c0_7 = arith.constant 0 : index
    %c0_8 = arith.constant 0 : index
    %c0_9 = arith.constant 0 : index
    %11 = vector.load %arg4[%c0_7, %c0_8, %c0_9] : memref<3x8x8xbf16, #tpu.memory_space<vmem>>, vector<1x8x8xbf16>
    %12 = vector.shape_cast %11 : vector<1x8x8xbf16> to vector<8x8xbf16>
    %13 = arith.truncf %10 : vector<8x128xf32> to vector<8x128xbf16>
    %cst_10 = arith.constant dense<0.000000e+00> : vector<8x128xf32>
    %14 = tpu.matmul %12, %13, %cst_10 {dimension_numbers = #tpu.dot_dimension_numbers<[1], [0], [0], [1], [0, 0, 1, 1], [], []>} : vector<8x8xbf16>, vector<8x128xbf16>, vector<8x128xf32> -> vector<8x128xf32>
    %c0_11 = arith.constant 0 : index
    %c0_12 = arith.constant 0 : index
    %c0_13 = arith.constant 0 : index
    %15 = vector.load %arg5[%c0_11, %c0_12, %c0_13] : memref<3x8x1xf32, #tpu.memory_space<vmem>>, vector<1x8x1xf32>
    %16 = vector.shape_cast %15 : vector<1x8x1xf32> to vector<8x1xf32>
    %17 = vector.broadcast %16 : vector<8x1xf32> to vector<8x128xf32>
    %18 = arith.addf %14, %17 : vector<8x128xf32>
    %cst_14 = arith.constant 0.000000e+00 : f32
    %19 = vector.broadcast %cst_14 : f32 to vector<8x128xf32>
    %20 = arith.cmpf ogt, %18, %19 : vector<8x128xf32>
    %cst_15 = arith.constant 1.000000e-01 : f32
    %21 = vector.broadcast %cst_15 : f32 to vector<8x128xf32>
    %22 = arith.mulf %21, %18 : vector<8x128xf32>
    %23 = arith.select %20, %18, %22 : vector<8x128xi1>, vector<8x128xf32>
    %c0_16 = arith.constant 0 : index
    %c0_17 = arith.constant 0 : index
    %c0_18 = arith.constant 0 : index
    %24 = vector.load %arg6[%c0_16, %c0_17, %c0_18] : memref<3x8x8xbf16, #tpu.memory_space<vmem>>, vector<1x8x8xbf16>
    %25 = vector.shape_cast %24 : vector<1x8x8xbf16> to vector<8x8xbf16>
    %26 = arith.truncf %23 : vector<8x128xf32> to vector<8x128xbf16>
    %cst_19 = arith.constant dense<0.000000e+00> : vector<8x128xf32>
    %27 = tpu.matmul %25, %26, %cst_19 {dimension_numbers = #tpu.dot_dimension_numbers<[1], [0], [0], [1], [0, 0, 1, 1], [], []>} : vector<8x8xbf16>, vector<8x128xbf16>, vector<8x128xf32> -> vector<8x128xf32>
    %c0_20 = arith.constant 0 : index
    %c0_21 = arith.constant 0 : index
    %c0_22 = arith.constant 0 : index
    %28 = vector.load %arg7[%c0_20, %c0_21, %c0_22] : memref<3x8x1xf32, #tpu.memory_space<vmem>>, vector<1x8x1xf32>
    %29 = vector.shape_cast %28 : vector<1x8x1xf32> to vector<8x1xf32>
    %30 = vector.broadcast %29 : vector<8x1xf32> to vector<8x128xf32>
    %31 = arith.addf %27, %30 : vector<8x128xf32>
    %32 = arith.addf %31, %10 : vector<8x128xf32>
    %cst_23 = arith.constant 0.000000e+00 : f32
    %33 = vector.broadcast %cst_23 : f32 to vector<8x128xf32>
    %34 = arith.cmpf ogt, %32, %33 : vector<8x128xf32>
    %cst_24 = arith.constant 1.000000e-01 : f32
    %35 = vector.broadcast %cst_24 : f32 to vector<8x128xf32>
    %36 = arith.mulf %35, %32 : vector<8x128xf32>
    %37 = arith.select %34, %32, %36 : vector<8x128xi1>, vector<8x128xf32>
    %c1 = arith.constant 1 : index
    %c0_25 = arith.constant 0 : index
    %c0_26 = arith.constant 0 : index
    %38 = vector.load %arg4[%c1, %c0_25, %c0_26] : memref<3x8x8xbf16, #tpu.memory_space<vmem>>, vector<1x8x8xbf16>
    %39 = vector.shape_cast %38 : vector<1x8x8xbf16> to vector<8x8xbf16>
    %40 = arith.truncf %37 : vector<8x128xf32> to vector<8x128xbf16>
    %cst_27 = arith.constant dense<0.000000e+00> : vector<8x128xf32>
    %41 = tpu.matmul %39, %40, %cst_27 {dimension_numbers = #tpu.dot_dimension_numbers<[1], [0], [0], [1], [0, 0, 1, 1], [], []>} : vector<8x8xbf16>, vector<8x128xbf16>, vector<8x128xf32> -> vector<8x128xf32>
    %c1_28 = arith.constant 1 : index
    %c0_29 = arith.constant 0 : index
    %c0_30 = arith.constant 0 : index
    %42 = vector.load %arg5[%c1_28, %c0_29, %c0_30] : memref<3x8x1xf32, #tpu.memory_space<vmem>>, vector<1x8x1xf32>
    %43 = vector.shape_cast %42 : vector<1x8x1xf32> to vector<8x1xf32>
    %44 = vector.broadcast %43 : vector<8x1xf32> to vector<8x128xf32>
    %45 = arith.addf %41, %44 : vector<8x128xf32>
    %cst_31 = arith.constant 0.000000e+00 : f32
    %46 = vector.broadcast %cst_31 : f32 to vector<8x128xf32>
    %47 = arith.cmpf ogt, %45, %46 : vector<8x128xf32>
    %cst_32 = arith.constant 1.000000e-01 : f32
    %48 = vector.broadcast %cst_32 : f32 to vector<8x128xf32>
    %49 = arith.mulf %48, %45 : vector<8x128xf32>
    %50 = arith.select %47, %45, %49 : vector<8x128xi1>, vector<8x128xf32>
    %c1_33 = arith.constant 1 : index
    %c0_34 = arith.constant 0 : index
    %c0_35 = arith.constant 0 : index
    %51 = vector.load %arg6[%c1_33, %c0_34, %c0_35] : memref<3x8x8xbf16, #tpu.memory_space<vmem>>, vector<1x8x8xbf16>
    %52 = vector.shape_cast %51 : vector<1x8x8xbf16> to vector<8x8xbf16>
    %53 = arith.truncf %50 : vector<8x128xf32> to vector<8x128xbf16>
    %cst_36 = arith.constant dense<0.000000e+00> : vector<8x128xf32>
    %54 = tpu.matmul %52, %53, %cst_36 {dimension_numbers = #tpu.dot_dimension_numbers<[1], [0], [0], [1], [0, 0, 1, 1], [], []>} : vector<8x8xbf16>, vector<8x128xbf16>, vector<8x128xf32> -> vector<8x128xf32>
    %c1_37 = arith.constant 1 : index
    %c0_38 = arith.constant 0 : index
    %c0_39 = arith.constant 0 : index
    %55 = vector.load %arg7[%c1_37, %c0_38, %c0_39] : memref<3x8x1xf32, #tpu.memory_space<vmem>>, vector<1x8x1xf32>
    %56 = vector.shape_cast %55 : vector<1x8x1xf32> to vector<8x1xf32>
    %57 = vector.broadcast %56 : vector<8x1xf32> to vector<8x128xf32>
    %58 = arith.addf %54, %57 : vector<8x128xf32>
    %59 = arith.addf %58, %37 : vector<8x128xf32>
    %cst_40 = arith.constant 0.000000e+00 : f32
    %60 = vector.broadcast %cst_40 : f32 to vector<8x128xf32>
    %61 = arith.cmpf ogt, %59, %60 : vector<8x128xf32>
    %cst_41 = arith.constant 1.000000e-01 : f32
    %62 = vector.broadcast %cst_41 : f32 to vector<8x128xf32>
    %63 = arith.mulf %62, %59 : vector<8x128xf32>
    %64 = arith.select %61, %59, %63 : vector<8x128xi1>, vector<8x128xf32>
    %c2 = arith.constant 2 : index
    %c0_42 = arith.constant 0 : index
    %c0_43 = arith.constant 0 : index
    %65 = vector.load %arg4[%c2, %c0_42, %c0_43] : memref<3x8x8xbf16, #tpu.memory_space<vmem>>, vector<1x8x8xbf16>
    %66 = vector.shape_cast %65 : vector<1x8x8xbf16> to vector<8x8xbf16>
    %67 = arith.truncf %64 : vector<8x128xf32> to vector<8x128xbf16>
    %cst_44 = arith.constant dense<0.000000e+00> : vector<8x128xf32>
    %68 = tpu.matmul %66, %67, %cst_44 {dimension_numbers = #tpu.dot_dimension_numbers<[1], [0], [0], [1], [0, 0, 1, 1], [], []>} : vector<8x8xbf16>, vector<8x128xbf16>, vector<8x128xf32> -> vector<8x128xf32>
    %c2_45 = arith.constant 2 : index
    %c0_46 = arith.constant 0 : index
    %c0_47 = arith.constant 0 : index
    %69 = vector.load %arg5[%c2_45, %c0_46, %c0_47] : memref<3x8x1xf32, #tpu.memory_space<vmem>>, vector<1x8x1xf32>
    %70 = vector.shape_cast %69 : vector<1x8x1xf32> to vector<8x1xf32>
    %71 = vector.broadcast %70 : vector<8x1xf32> to vector<8x128xf32>
    %72 = arith.addf %68, %71 : vector<8x128xf32>
    %cst_48 = arith.constant 0.000000e+00 : f32
    %73 = vector.broadcast %cst_48 : f32 to vector<8x128xf32>
    %74 = arith.cmpf ogt, %72, %73 : vector<8x128xf32>
    %cst_49 = arith.constant 1.000000e-01 : f32
    %75 = vector.broadcast %cst_49 : f32 to vector<8x128xf32>
    %76 = arith.mulf %75, %72 : vector<8x128xf32>
    %77 = arith.select %74, %72, %76 : vector<8x128xi1>, vector<8x128xf32>
    %c2_50 = arith.constant 2 : index
    %c0_51 = arith.constant 0 : index
    %c0_52 = arith.constant 0 : index
    %78 = vector.load %arg6[%c2_50, %c0_51, %c0_52] : memref<3x8x8xbf16, #tpu.memory_space<vmem>>, vector<1x8x8xbf16>
    %79 = vector.shape_cast %78 : vector<1x8x8xbf16> to vector<8x8xbf16>
    %80 = arith.truncf %77 : vector<8x128xf32> to vector<8x128xbf16>
    %cst_53 = arith.constant dense<0.000000e+00> : vector<8x128xf32>
    %81 = tpu.matmul %79, %80, %cst_53 {dimension_numbers = #tpu.dot_dimension_numbers<[1], [0], [0], [1], [0, 0, 1, 1], [], []>} : vector<8x8xbf16>, vector<8x128xbf16>, vector<8x128xf32> -> vector<8x128xf32>
    %c2_54 = arith.constant 2 : index
    %c0_55 = arith.constant 0 : index
    %c0_56 = arith.constant 0 : index
    %82 = vector.load %arg7[%c2_54, %c0_55, %c0_56] : memref<3x8x1xf32, #tpu.memory_space<vmem>>, vector<1x8x1xf32>
    %83 = vector.shape_cast %82 : vector<1x8x1xf32> to vector<8x1xf32>
    %84 = vector.broadcast %83 : vector<8x1xf32> to vector<8x128xf32>
    %85 = arith.addf %81, %84 : vector<8x128xf32>
    %86 = arith.addf %85, %64 : vector<8x128xf32>
    %cst_57 = arith.constant 0.000000e+00 : f32
    %87 = vector.broadcast %cst_57 : f32 to vector<8x128xf32>
    %88 = arith.cmpf ogt, %86, %87 : vector<8x128xf32>
    %cst_58 = arith.constant 1.000000e-01 : f32
    %89 = vector.broadcast %cst_58 : f32 to vector<8x128xf32>
    %90 = arith.mulf %89, %86 : vector<8x128xf32>
    %91 = arith.select %88, %86, %90 : vector<8x128xi1>, vector<8x128xf32>
    %c0_59 = arith.constant 0 : index
    %c0_60 = arith.constant 0 : index
    %92 = vector.load %arg8[%c0_59, %c0_60] : memref<8x8xbf16, #tpu.memory_space<vmem>>, vector<8x8xbf16>
    %93 = arith.truncf %91 : vector<8x128xf32> to vector<8x128xbf16>
    %cst_61 = arith.constant dense<0.000000e+00> : vector<8x128xf32>
    %94 = tpu.matmul %92, %93, %cst_61 {dimension_numbers = #tpu.dot_dimension_numbers<[1], [0], [0], [1], [0, 0, 1, 1], [], []>} : vector<8x8xbf16>, vector<8x128xbf16>, vector<8x128xf32> -> vector<8x128xf32>
    %c0_62 = arith.constant 0 : index
    %c0_63 = arith.constant 0 : index
    %95 = vector.load %arg9[%c0_62, %c0_63] : memref<8x1xf32, #tpu.memory_space<vmem>>, vector<8x1xf32>
    %96 = vector.broadcast %95 : vector<8x1xf32> to vector<8x128xf32>
    %97 = arith.addf %94, %96 : vector<8x128xf32>
    %cst_64 = arith.constant 0.000000e+00 : f32
    %98 = vector.broadcast %cst_64 : f32 to vector<8x128xf32>
    %99 = arith.maximumf %97, %98 : vector<8x128xf32>
    %100 = arith.truncf %99 : vector<8x128xf32> to vector<8x128xbf16>
    %c0_65 = arith.constant 0 : index
    %c0_66 = arith.constant 0 : index
    %101 = vector.load %arg10[%c0_65, %c0_66] : memref<8x128xbf16, #tpu.memory_space<vmem>>, vector<8x128xbf16>
    tpu.vector_store %arg10[%c0_65, %c0_66], %100 {strides = array<i32>} : memref<8x128xbf16, #tpu.memory_space<vmem>>, vector<8x128xbf16>,
    return
  }
  func.func @transform_0(%arg0: i32) -> (i32, i32) {
    %c0_i32 = arith.constant 0 : i32
    %c0_i32_0 = arith.constant 0 : i32
    return %c0_i32, %arg0 : i32, i32
  }
  func.func @transform_1(%arg0: i32) -> (i32, i32) {
    %c0_i32 = arith.constant 0 : i32
    %c0_i32_0 = arith.constant 0 : i32
    %c0_i32_1 = arith.constant 0 : i32
    return %c0_i32, %c0_i32_0 : i32, i32
  }
  func.func @transform_2(%arg0: i32) -> (i32, i32) {
    %c0_i32 = arith.constant 0 : i32
    %c0_i32_0 = arith.constant 0 : i32
    %c0_i32_1 = arith.constant 0 : i32
    return %c0_i32, %c0_i32_0 : i32, i32
  }
  func.func @transform_3(%arg0: i32) -> (i32, i32, i32) {
    %c0_i32 = arith.constant 0 : i32
    %c0_i32_0 = arith.constant 0 : i32
    %c0_i32_1 = arith.constant 0 : i32
    %c0_i32_2 = arith.constant 0 : i32
    return %c0_i32, %c0_i32_0, %c0_i32_1 : i32, i32, i32
  }
  func.func @transform_4(%arg0: i32) -> (i32, i32, i32) {
    %c0_i32 = arith.constant 0 : i32
    %c0_i32_0 = arith.constant 0 : i32
    %c0_i32_1 = arith.constant 0 : i32
    %c0_i32_2 = arith.constant 0 : i32
    return %c0_i32, %c0_i32_0, %c0_i32_1 : i32, i32, i32
  }
  func.func @transform_5(%arg0: i32) -> (i32, i32, i32) {
    %c0_i32 = arith.constant 0 : i32
    %c0_i32_0 = arith.constant 0 : i32
    %c0_i32_1 = arith.constant 0 : i32
    %c0_i32_2 = arith.constant 0 : i32
    return %c0_i32, %c0_i32_0, %c0_i32_1 : i32, i32, i32
  }
  func.func @transform_6(%arg0: i32) -> (i32, i32, i32) {
    %c0_i32 = arith.constant 0 : i32
    %c0_i32_0 = arith.constant 0 : i32
    %c0_i32_1 = arith.constant 0 : i32
    %c0_i32_2 = arith.constant 0 : i32
    return %c0_i32, %c0_i32_0, %c0_i32_1 : i32, i32, i32
  }
  func.func @transform_7(%arg0: i32) -> (i32, i32) {
    %c0_i32 = arith.constant 0 : i32
    %c0_i32_0 = arith.constant 0 : i32
    %c0_i32_1 = arith.constant 0 : i32
    return %c0_i32, %c0_i32_0 : i32, i32
  }
  func.func @transform_8(%arg0: i32) -> (i32, i32) {
    %c0_i32 = arith.constant 0 : i32
    %c0_i32_0 = arith.constant 0 : i32
    %c0_i32_1 = arith.constant 0 : i32
    return %c0_i32, %c0_i32_0 : i32, i32
  }
  func.func @transform_9(%arg0: i32) -> (i32, i32) {
    %c0_i32 = arith.constant 0 : i32
    %c0_i32_0 = arith.constant 0 : i32
    return %c0_i32, %arg0 : i32, i32
  }
}

</mosaic_0001>

<bundles_post_ra>
// kernel: tpu_custom_call.1
= control target key start
LH: loop header
LB: loop body
LE: loop exit
PB: predicated region body
PF: predicated region fallthrough
CT: control target
= control target key end

     0   :  { %vm46_vm0 = vcmask 1041408   ;;  %v627_v1 = vmov 0.0   ;;  %vm628_vm1 = vmmov 0   ;;  %vm42_vm2 = vcmask 31744   ;;  %s773_s0 = inlined_call_operand.vmem [shape: bf16[4,128], index: 0, kind: input, shape index: {}]   ;;  %s774_s1 = inlined_call_operand.vmem [shape: bf16[8,4], index: 1, kind: input, shape index: {}]   ;;  %s775_s2 = inlined_call_operand.vmem [shape: f32[8,1], index: 2, kind: input, shape index: {}]   ;;  %s776_s3 = inlined_call_operand.vmem [shape: bf16[3,8,8], index: 3, kind: input, shape index: {}]   ;;  %s777_s4 = inlined_call_operand.vmem [shape: f32[3,8,1], index: 4, kind: input, shape index: {}]   ;;  %s778_s5 = inlined_call_operand.vmem [shape: bf16[3,8,8], index: 5, kind: input, shape index: {}]   ;;  %s779_s6 = inlined_call_operand.vmem [shape: f32[3,8,1], index: 6, kind: input, shape index: {}]   ;;  %s780_s7 = inlined_call_operand.vmem [shape: bf16[8,8], index: 7, kind: input, shape index: {}]   ;;  %s781_s8 = inlined_call_operand.vmem [shape: f32[8,1], index: 8, kind: input, shape index: {}]   ;;  %s782_s9 = inlined_call_operand.hbm [shape: bf16[8,128], index: 9, kind: output, shape index: {}]  }
   0x1   :  { %v34_v0 = vld [vmem:[%s773_s0] sm:$0x3]  ;;  %551 = vmatprep.subr.bf16.mxu0 %v627_v1  ;;  %553 = vmatprep.mubr.msk.bf16.mxu0 %vm628_vm1, %v627_v1  ;;  %v629_v5 = vmov 0  }
   0x2   :  { %v48_v2 = vsel %vm46_vm0, %v34_v0, 0  ;;  %v36_v3 = vld [vmem:[%s775_s2] sm:$0xff]  ;;  %603 = vset.pattern.permute.xlu0 %v629_v5 }
   0x3   :  { %552 = vmatpush3.bf16.msra.mxu0 %v48_v2  ;;  %v35_v4 = vld [vmem:[%s774_s1] sm:$0xf] }
   0x4   :  { %14 = vsyncpa [#allocation3], 0  ;;  %39 = vperm.xlu0 %603, %v36_v3   ;;  %557 = vmatprep.subr.bf16.mxu1 %v627_v1  ;;  %v95_v6 = vld [vmem:[%s777_s4] sm:$0xff]  ;;  %v526_v7 = vld [vmem:[%s779_s6 + $0x8] sm:$0xff]  ;;  %vm105_vm4 = vcmask 1043456   ;;  %vm101_vm5 = vcmask 64512  }
   0x5   :  { %559 = vmatprep.mubr.msk.bf16.mxu1 %vm628_vm1, %v627_v1  ;;  %563 = vmatprep.subr.bf16.mxu0 %v627_v1  ;;  %v532_v8 = vld [vmem:[%s779_s6 + $0x10] sm:$0xff]  ;;  %v93_v19 = vld [vmem:[%s776_s3] sm:$0xf]  ;;  %v523_v21 = vld [vmem:[%s777_s4 + $0x8] sm:$0xff] }
   0x6   :  { %554 = vmatmul.mubr.msk.bf16.vlgmr.msra.gmra.mxu0 %vm42_vm2, %v35_v4  ;;  %604 = vset.pattern.permute.xlu1 %v629_v5  ;;  %v154_v20 = vld [vmem:[%s779_s6] sm:$0xff]  ;;  %v529_v22 = vld [vmem:[%s777_s4 + $0x10] sm:$0xff] }
   0x7   :  { %565 = vmatprep.mubr.msk.bf16.mxu0 %vm628_vm1, %v627_v1  ;;  %157 = vperm.xlu1 %604, %v154_v20   ;;  %v450_v23 = vld [vmem:[%s781_s8] sm:$0xff] }
   0x8   :  { %98 = vperm.xlu0 %603, %v95_v6   ;;  %v152_v34 = vld [vmem:[%s778_s5] sm:$0xf]  ;;  %v522_v46 = vld [vmem:[%s776_s3 + $0x4] sm:$0xf]  ;;  %v528_v6 = vld [vmem:[%s776_s3 + $0x8] sm:$0xf] }
   0x9   :  { %v525_v57 = vld [vmem:[%s778_s5 + $0x4] sm:$0xf] }
   0xb   :  { %217 = vperm.xlu1 %604, %v523_v21  }
   0xc   :  { %276 = vperm.xlu0 %603, %v526_v7  }
   0xf   :  { %336 = vperm.xlu1 %604, %v529_v22  }
  0x10   :  { %395 = vperm.xlu0 %603, %v532_v8  }
  0x13   :  { %453 = vperm.xlu1 %604, %v450_v23  }
  0x7f   :  { %v40_v9 = vpop.permute.xlu0 %39 }
  0x82   :  { %v158_v35 = vpop.permute.xlu1 %157 }
  0x83   :  { %v99_v24 = vpop.permute.xlu0 %98 }
  0x86   :  { %v218_v47 = vpop.permute.xlu1 %217 }
  0x87   :  { %v277_v58 = vpop.permute.xlu0 %276 }
  0x8a   :  { %v337_v7 = vpop.permute.xlu1 %336 }
  0xc6   :  { %v84_v10 = vpop.f32.mrf.mxu0 }
  0xc7   :  { %v85_v11 = vadd.f32 %v84_v10, %v40_v9 }
  0xc8   :  { %v555_v12 = vpop.f32.mrf.mxu0 }
  0xc9   :  { %vm90_vm3 = vcmp.gt.f32.partialorder %v85_v11, 0.0  ;;  %v91_v13 = vmul.f32 0.1, %v85_v11 }
  0xca   :  { %v87_v14 = vpop.f32.mrf.mxu0 }
  0xcb   :  { %v92_v15 = vsel %vm90_vm3, %v85_v11, %v91_v13 }
  0xcc   :  { %v556_v16 = vpop.f32.mrf.mxu0  ;;  %v94_v17 = vpack.c.bf16 %v92_v15, %v92_v15 }
  0xce   :  { %v107_v18 = vsel %vm105_vm4, %v94_v17, 0  ;;  %v531_v17 = vld [vmem:[%s778_s5 + $0x8] sm:$0xf]  ;;  %s630_s5 = smov [#allocation2]  }
  0xcf   :  { %558 = vmatpush3.bf16.msra.mxu1 %v107_v18  ;;  %s511_s0 = sshll.u32 %s630_s5, 4  ;;  %s512_s0 = int_to_ptr.vmem [resolvable:$true] %s511_s0 }
  0xd0   :  { %569 = vmatprep.subr.bf16.mxu1 %v627_v1  ;;  %s605_s15 = scalar_lea.vmem %s512_s0, 64  ;;  %p610_p1 = scmp.lt.s32.totalorder %s512_s0, %s512_s0 }
  0xd1   :  { %p606_p0 = scmp.ne.s32.totalorder %s512_s0, %s605_s15  ;;  %p611_p2 = scmp.lt.s32.totalorder %s605_s15, %s605_s15 }
  0xd2   :  { %560 = vmatmul.mubr.msk.bf16.vlgmr.msra.gmra.mxu1 %vm101_vm5, %v93_v19 }
  0xd3   :  { %571 = vmatprep.mubr.msk.bf16.mxu1 %vm628_vm1, %v627_v1  ;;  %p612_p3 = por %p611_p2, %p610_p1 }
  0xd5   :  { %p613_p4 = pnand %p612_p3, %p606_p0 }
 0x192   :  { %v143_v25 = vpop.f32.mrf.mxu1 }
 0x193   :  { %v144_v26 = vadd.f32 %v143_v25, %v99_v24 }
 0x194   :  { %v561_v27 = vpop.f32.mrf.mxu1 }
 0x195   :  { %vm149_vm6 = vcmp.gt.f32.partialorder %v144_v26, 0.0  ;;  %v150_v28 = vmul.f32 0.1, %v144_v26 }
 0x196   :  { %v146_v29 = vpop.f32.mrf.mxu1 }
 0x197   :  { %v151_v30 = vsel %vm149_vm6, %v144_v26, %v150_v28  ;;  %v448_v28 = vld [vmem:[%s780_s7] sm:$0xf]  ;;  %v454_v29 = vpop.permute.xlu1 %453 }
 0x198   :  { %v153_v31 = vpack.c.bf16 %v151_v30, %v151_v30  ;;  %v562_v32 = vpop.f32.mrf.mxu1 }
 0x19a   :  { %v164_v33 = vsel %vm105_vm4, %v153_v31, 0 }
 0x19b   :  { %564 = vmatpush3.bf16.msra.mxu0 %v164_v33 }
 0x19c   :  { %575 = vmatprep.subr.bf16.mxu0 %v627_v1 }
 0x19e   :  { %566 = vmatmul.mubr.msk.bf16.vlgmr.msra.gmra.mxu0 %vm101_vm5, %v152_v34 }
 0x19f   :  { %577 = vmatprep.mubr.msk.bf16.mxu0 %vm628_vm1, %v627_v1 }
 0x25e   :  { %v200_v36 = vpop.f32.mrf.mxu0 }
 0x25f   :  { %v201_v37 = vadd.f32 %v200_v36, %v158_v35 }
 0x260   :  { %v567_v38 = vpop.f32.mrf.mxu0 }
 0x261   :  { %v206_v39 = vadd.f32 %v201_v37, %v92_v15 }
 0x262   :  { %v203_v40 = vpop.f32.mrf.mxu0 }
 0x263   :  { %vm207_vm7 = vcmp.gt.f32.partialorder %v206_v39, 0.0  ;;  %v208_v41 = vmul.f32 0.1, %v206_v39 }
 0x264   :  { %v568_v42 = vpop.f32.mrf.mxu0 }
 0x265   :  { %v209_v43 = vsel %vm207_vm7, %v206_v39, %v208_v41 }
 0x266   :  { %v212_v44 = vpack.c.bf16 %v209_v43, %v209_v43 }
 0x268   :  { %v224_v45 = vsel %vm105_vm4, %v212_v44, 0 }
 0x269   :  { %570 = vmatpush3.bf16.msra.mxu1 %v224_v45 }
 0x26a   :  { %581 = vmatprep.subr.bf16.mxu1 %v627_v1 }
 0x26c   :  { %572 = vmatmul.mubr.msk.bf16.vlgmr.msra.gmra.mxu1 %vm101_vm5, %v522_v46 }
 0x26d   :  { %583 = vmatprep.mubr.msk.bf16.mxu1 %vm628_vm1, %v627_v1 }
 0x32c   :  { %v260_v48 = vpop.f32.mrf.mxu1 }
 0x32d   :  { %v261_v49 = vadd.f32 %v260_v48, %v218_v47 }
 0x32e   :  { %v573_v50 = vpop.f32.mrf.mxu1 }
 0x32f   :  { %vm266_vm8 = vcmp.gt.f32.partialorder %v261_v49, 0.0  ;;  %v267_v51 = vmul.f32 0.1, %v261_v49 }
 0x330   :  { %v263_v52 = vpop.f32.mrf.mxu1 }
 0x331   :  { %v268_v53 = vsel %vm266_vm8, %v261_v49, %v267_v51 }
 0x332   :  { %v271_v54 = vpack.c.bf16 %v268_v53, %v268_v53  ;;  %v574_v55 = vpop.f32.mrf.mxu1 }
 0x334   :  { %v283_v56 = vsel %vm105_vm4, %v271_v54, 0 }
 0x335   :  { %576 = vmatpush3.bf16.msra.mxu0 %v283_v56 }
 0x336   :  { %587 = vmatprep.subr.bf16.mxu0 %v627_v1 }
 0x338   :  { %578 = vmatmul.mubr.msk.bf16.vlgmr.msra.gmra.mxu0 %vm101_vm5, %v525_v57 }
 0x339   :  { %589 = vmatprep.mubr.msk.bf16.mxu0 %vm628_vm1, %v627_v1 }
 0x3f8   :  { %v319_v59 = vpop.f32.mrf.mxu0 }
 0x3f9   :  { %v320_v60 = vadd.f32 %v319_v59, %v277_v58 }
 0x3fa   :  { %v579_v61 = vpop.f32.mrf.mxu0 }
 0x3fb   :  { %v325_v62 = vadd.f32 %v320_v60, %v209_v43 }
 0x3fc   :  { %v322_v63 = vpop.f32.mrf.mxu0 }
 0x3fd   :  { %vm326_vm9 = vcmp.gt.f32.partialorder %v325_v62, 0.0  ;;  %v327_v0 = vmul.f32 0.1, %v325_v62 }
 0x3fe   :  { %v580_v2 = vpop.f32.mrf.mxu0 }
 0x3ff   :  { %v328_v3 = vsel %vm326_vm9, %v325_v62, %v327_v0 }
 0x400   :  { %v331_v4 = vpack.c.bf16 %v328_v3, %v328_v3 }
 0x402   :  { %v343_v5 = vsel %vm105_vm4, %v331_v4, 0 }
 0x403   :  { %582 = vmatpush3.bf16.msra.mxu1 %v343_v5 }
 0x404   :  { %593 = vmatprep.subr.bf16.mxu1 %v627_v1 }
 0x406   :  { %584 = vmatmul.mubr.msk.bf16.vlgmr.msra.gmra.mxu1 %vm101_vm5, %v528_v6 }
 0x407   :  { %595 = vmatprep.mubr.msk.bf16.mxu1 %vm628_vm1, %v627_v1  ;;  %v396_v1 = vpop.permute.xlu0 %395 }
 0x4c6   :  { %v379_v8 = vpop.f32.mrf.mxu1 }
 0x4c7   :  { %v380_v9 = vadd.f32 %v379_v8, %v337_v7 }
 0x4c8   :  { %v585_v10 = vpop.f32.mrf.mxu1 }
 0x4c9   :  { %vm385_vm10 = vcmp.gt.f32.partialorder %v380_v9, 0.0  ;;  %v386_v11 = vmul.f32 0.1, %v380_v9 }
 0x4ca   :  { %v382_v12 = vpop.f32.mrf.mxu1 }
 0x4cb   :  { %v387_v13 = vsel %vm385_vm10, %v380_v9, %v386_v11 }
 0x4cc   :  { %v390_v14 = vpack.c.bf16 %v387_v13, %v387_v13  ;;  %v586_v15 = vpop.f32.mrf.mxu1 }
 0x4ce   :  { %v402_v16 = vsel %vm105_vm4, %v390_v14, 0 }
 0x4cf   :  { %588 = vmatpush3.bf16.msra.mxu0 %v402_v16 }
 0x4d2   :  { %590 = vmatmul.mubr.msk.bf16.vlgmr.msra.gmra.mxu0 %vm101_vm5, %v531_v17 }
 0x592   :  { %v438_v18 = vpop.f32.mrf.mxu0 }
 0x593   :  { %v439_v19 = vadd.f32 %v438_v18, %v396_v1 }
 0x594   :  { %v591_v20 = vpop.f32.mrf.mxu0 }
 0x595   :  { %v444_v21 = vadd.f32 %v439_v19, %v328_v3 }
 0x596   :  { %v441_v22 = vpop.f32.mrf.mxu0 }
 0x597   :  { %vm445_vm11 = vcmp.gt.f32.partialorder %v444_v21, 0.0  ;;  %v446_v23 = vmul.f32 0.1, %v444_v21 }
 0x598   :  { %v592_v24 = vpop.f32.mrf.mxu0 }
 0x599   :  { %v447_v25 = vsel %vm445_vm11, %v444_v21, %v446_v23 }
 0x59a   :  { %v449_v26 = vpack.c.bf16 %v447_v25, %v447_v25 }
 0x59c   :  { %v460_v27 = vsel %vm105_vm4, %v449_v26, 0 }
 0x59d   :  { %594 = vmatpush3.bf16.msra.mxu1 %v460_v27 }
 0x5a0   :  { %596 = vmatmul.mubr.msk.bf16.vlgmr.msra.gmra.mxu1 %vm101_vm5, %v448_v28 }
 0x660   :  { %v496_v30 = vpop.f32.mrf.mxu1 }
 0x661   :  { %v497_v31 = vadd.f32 %v496_v30, %v454_v29 }
 0x662   :  { %v597_v32 = vpop.f32.mrf.mxu1 }
 0x663   :  { %v502_v33 = vmax.f32 %v497_v31, 0.0 }
 0x664   :  { %v499_v34 = vpop.f32.mrf.mxu1 }
 0x665   :  { %v503_v35 = vpack.c.bf16 %v502_v33, %v502_v33 }
 0x666   :  { %v598_v36 = vpop.f32.mrf.mxu1 }
 0x667   :  { %504 = vst [vmem:[#allocation2] sm:$0xf] %v503_v35 }
 0x668   :  { %616 = shalt.err (!%p613_p4)
}
 0x669   :  { %514 = dma.vmem_to_hbm [thread:$0]  %s512_s0, 64, %s782_s9, [#allocation3]  }
 0x66a   :  { %625 = dma.done.wait [#allocation3], 64  }
 0x66b   :  { %626 = vsyncadd [#allocation3], 4294967232 }
 0x66c   :  { %518 = vsyncpa [#allocation3], 1 }

</bundles_post_ra>
